<compile_context>
chip_gen: v5e
topology: v5e:2x2
jax: 0.10.0
libtpu: 0.0.40
codegen_flags: <defaults>
</compile_context>

<pallas_src>
import jax
import jax.numpy as jnp
from jax.experimental import pallas as pl
from jax.experimental.pallas import tpu as pltpu


# ----------------------------------------------------------------------------- kernel

def _fusion_kernel(x1_ref, x2_ref, w1a_ref, w1b_ref, b1_ref,
                   w2_ref, b2_ref, w3_ref, b3_ref, o_ref):
    cdt = w1a_ref.dtype                      # bf16 compute dtype for the MXU
    x1 = x1_ref[...].astype(cdt)             # cast in-kernel: no extra HBM pass in the wrapper
    x2 = x2_ref[...].astype(cdt)
    # concat([x1, x2], -1) @ W1  ==  x1 @ W1[:d] + x2 @ W1[d:]  (no materialized concat)
    h1 = (jnp.dot(x1, w1a_ref[...], preferred_element_type=jnp.float32)
          + jnp.dot(x2, w1b_ref[...], preferred_element_type=jnp.float32)
          + b1_ref[...])
    h1 = jnp.maximum(h1, 0.0).astype(cdt)    # ReLU in f32 (v5e-safe), bf16 into the next MXU op
    h2 = jnp.dot(h1, w2_ref[...], preferred_element_type=jnp.float32) + b2_ref[...]
    h2 = jnp.maximum(h2, 0.0).astype(cdt)
    out = jnp.dot(h2, w3_ref[...], preferred_element_type=jnp.float32) + b3_ref[...]
    o_ref[...] = out.astype(o_ref.dtype)


# ----------------------------------------------------------------------------- helpers

def _round_up(x, m):
    return ((x + m - 1) // m) * m


def _vmem_capacity_bytes():
    try:
        return int(pltpu.get_tpu_info().vmem_capacity_bytes)
    except Exception:
        return 64 << 20  # conservative: v7x per-TensorCore VMEM


def _weight_vmem_bytes(input_dim, output_dim, w_itemsize):
    # W1a + W1b + W2 + W3, default double-buffered (constant index_map -> only one DMA ever).
    w = (2 * input_dim * input_dim + input_dim * input_dim + input_dim * output_dim) * w_itemsize
    b = (2 * input_dim + output_dim) * 4
    return 2 * (w + b)


def _per_row_vmem_bytes(input_dim, output_dim, x_itemsize, o_itemsize):
    # Double-buffered x1/x2 and out tiles + in-kernel live values:
    #   bf16 copies of x1/x2, h1/h2 in f32 and bf16, f32 pre-cast output tile.
    io = 2 * 2 * input_dim * x_itemsize + 2 * output_dim * o_itemsize
    interm = 2 * input_dim * 2 + 2 * input_dim * (4 + 2) + output_dim * 4
    return io + interm


# ----------------------------------------------------------------------------- wrapper

def cat_feature_fusion(x1, x2, params, *, compute_dtype=jnp.bfloat16, max_row_tile=8192):
    """x1, x2: (..., input_dim). Returns (..., output_dim). Matches the PyTorch module."""
    w1, b1, w2, b2, w3, b3 = params          # w1: (2*input_dim, input_dim) in (in, out) layout
    input_dim = x1.shape[-1]
    output_dim = w3.shape[-1]
    out_dtype = x1.dtype

    lead_shape = x1.shape[:-1]
    M = 1
    for d in lead_shape:
        M *= d
    x1f = x1.reshape(M, input_dim)           # metadata-only reshape (no HBM copy)
    x2f = x2.reshape(M, input_dim)

    x_itemsize = jnp.dtype(x1.dtype).itemsize
    o_itemsize = jnp.dtype(out_dtype).itemsize
    w_itemsize = jnp.dtype(compute_dtype).itemsize

    # --- generation-aware row-tile sizing -------------------------------------
    capacity = _vmem_capacity_bytes()
    budget = int(0.70 * capacity)            # ~45 MiB on v7x (64 MiB), ~90 MiB on v5e/v6e (128 MiB)
    weight_bytes = _weight_vmem_bytes(input_dim, output_dim, w_itemsize)
    per_row = _per_row_vmem_bytes(input_dim, output_dim, x_itemsize, o_itemsize)

    rt = max(8, (budget - weight_bytes) // per_row)          # grow to fill the VMEM budget
    rt = min(rt, max_row_tile)                               # per-step DMA already huge beyond this
    rt = min(rt, max(8, _round_up(pl.cdiv(M, 4), 8)))        # keep >=4 grid steps when M allows (v7x)
    rt = min(rt, _round_up(M, 8))                            # never exceed the (padded) row count
    rt = max(8, (rt // 8) * 8)                               # (8,128) sublane constraint
    grid = (pl.cdiv(M, rt),)                                 # ragged tail handled by Pallas masking

    est = weight_bytes + rt * per_row
    vmem_limit = int(min(max(int(est * 1.5), 32 << 20), int(0.85 * capacity)))

    # --- weights: tiny, one-time cast/pack outside the hot path ---------------
    w1a = w1[:input_dim].astype(compute_dtype)
    w1b = w1[input_dim:].astype(compute_dtype)
    w2c = w2.astype(compute_dtype)
    w3c = w3.astype(compute_dtype)
    b1c = b1.reshape(1, input_dim).astype(jnp.float32)
    b2c = b2.reshape(1, input_dim).astype(jnp.float32)
    b3c = b3.reshape(1, output_dim).astype(jnp.float32)

    x_spec = pl.BlockSpec((rt, input_dim), lambda i: (i, 0))

    def const_spec(shape):
        return pl.BlockSpec(shape, lambda i: (0, 0))         # resident across the grid

    flops = 2 * M * (3 * input_dim * input_dim + input_dim * output_dim)
    bytes_accessed = (2 * M * input_dim * x_itemsize
                      + M * output_dim * o_itemsize
                      + weight_bytes // 2)

    out = pl.pallas_call(
        _fusion_kernel,
        out_shape=jax.ShapeDtypeStruct((M, output_dim), out_dtype),
        grid_spec=pltpu.PrefetchScalarGridSpec(
            num_scalar_prefetch=0,
            grid=grid,
            in_specs=[x_spec, x_spec,
                      const_spec(w1a.shape), const_spec(w1b.shape), const_spec(b1c.shape),
                      const_spec(w2c.shape), const_spec(b2c.shape),
                      const_spec(w3c.shape), const_spec(b3c.shape)],
            out_specs=pl.BlockSpec((rt, output_dim), lambda i: (i, 0)),
        ),
        compiler_params=pltpu.CompilerParams(
            dimension_semantics=("parallel",),
            vmem_limit_bytes=vmem_limit,
        ),
        cost_estimate=pl.CostEstimate(
            flops=flops, transcendentals=0, bytes_accessed=bytes_accessed),
    )(x1f, x2f, w1a, w1b, b1c, w2c, b2c, w3c, b3c)

    return out.reshape(*lead_shape, output_dim)


# ----------------------------------------------------------------------------- init / reference

def init_params(key, input_dim, output_dim, dtype=jnp.float32):
    """Synthetic init matching the PyTorch module's shapes (weights in (in, out) layout)."""
    ks = jax.random.split(key, 6)
    s1 = 1.0 / jnp.sqrt(2.0 * input_dim)
    s2 = 1.0 / jnp.sqrt(1.0 * input_dim)
    w1 = jax.random.uniform(ks[0], (2 * input_dim, input_dim), dtype, -s1, s1)
    b1 = jax.random.uniform(ks[1], (1, input_dim), dtype, -s1, s1)
    w2 = jax.random.uniform(ks[2], (input_dim, input_dim), dtype, -s2, s2)
    b2 = jax.random.uniform(ks[3], (1, input_dim), dtype, -s2, s2)
    w3 = jax.random.uniform(ks[4], (input_dim, output_dim), dtype, -s2, s2)
    b3 = jax.random.uniform(ks[5], (1, output_dim), dtype, -s2, s2)
    return (w1, b1, w2, b2, w3, b3)


def _reference(x1, x2, params, compute_dtype=jnp.bfloat16):
    """Pure-JAX reference mirroring the kernel's mixed precision (bf16 MXU inputs, f32 acc)."""
    w1, b1, w2, b2, w3, b3 = params
    x = jnp.concatenate([x1, x2], axis=-1).astype(compute_dtype)
    h = jnp.dot(x, w1.astype(compute_dtype), preferred_element_type=jnp.float32) + b1[0]
    h = jnp.maximum(h, 0.0).astype(compute_dtype)
    h = jnp.dot(h, w2.astype(compute_dtype), preferred_element_type=jnp.float32) + b2[0]
    h = jnp.maximum(h, 0.0).astype(compute_dtype)
    out = jnp.dot(h, w3.astype(compute_dtype), preferred_element_type=jnp.float32) + b3[0]
    return out.astype(x1.dtype)


# ----------------------------------------------------------------------------- main

if __name__ == "__main__":
    key = jax.random.PRNGKey(0)

    # Small-feature config.
    batch, seq, input_dim, output_dim = 2, 8, 32, 16
    k1, k2, kp, k3, k4, kq = jax.random.split(key, 6)
    x1 = jax.random.normal(k1, (batch, seq, input_dim), jnp.float32)
    x2 = jax.random.normal(k2, (batch, seq, input_dim), jnp.float32)
    params = init_params(kp, input_dim, output_dim)

    out = cat_feature_fusion(x1, x2, params)
    out = jax.block_until_ready(out)
    ref = _reference(x1, x2, params)
    assert out.shape == (batch, seq, output_dim)
    assert jnp.allclose(out, ref, atol=2e-2, rtol=2e-2), "mismatch vs JAX reference (d=32)"

    # Wider-feature config.
    input_dim2, output_dim2 = 128, 32
    y1 = jax.random.normal(k3, (batch, seq, input_dim2), jnp.float32)
    y2 = jax.random.normal(k4, (batch, seq, input_dim2), jnp.float32)
    params2 = init_params(kq, input_dim2, output_dim2)

    out2 = cat_feature_fusion(y1, y2, params2)
    out2 = jax.block_until_ready(out2)
    ref2 = _reference(y1, y2, params2)
    assert out2.shape == (batch, seq, output_dim2)
    assert jnp.allclose(out2, ref2, atol=2e-2, rtol=2e-2), "mismatch vs JAX reference (d=128)"

    print("KERNEL_OK")
</pallas_src>

<mosaic_0001>
module attributes {stable_mosaic.version = 11 : i64} {
  func.func @_fusion_kernel(%arg0: i32, %arg1: memref<8x32xf32, #tpu.memory_space<vmem>>, %arg2: memref<8x32xf32, #tpu.memory_space<vmem>>, %arg3: memref<32x32xbf16, #tpu.memory_space<vmem>>, %arg4: memref<32x32xbf16, #tpu.memory_space<vmem>>, %arg5: memref<1x32xf32, #tpu.memory_space<vmem>>, %arg6: memref<32x32xbf16, #tpu.memory_space<vmem>>, %arg7: memref<1x32xf32, #tpu.memory_space<vmem>>, %arg8: memref<32x16xbf16, #tpu.memory_space<vmem>>, %arg9: memref<1x16xf32, #tpu.memory_space<vmem>>, %arg10: memref<8x16xf32, #tpu.memory_space<vmem>>) attributes {dimension_semantics = [#tpu.dimension_semantics<parallel>], iteration_bounds = array<i64: 2>, scalar_prefetch = 0 : i64, scratch_operands = 0 : i64, tpu.core_type = #tpu.core_type<tc>, window_params = [{transform_indices = @transform_0, window_bounds = array<i64: 8, 32>}, {transform_indices = @transform_1, window_bounds = array<i64: 8, 32>}, {pipeline_mode = #tpu.pipeline_mode<synchronous>, transform_indices = @transform_2, window_bounds = array<i64: 32, 32>}, {pipeline_mode = #tpu.pipeline_mode<synchronous>, transform_indices = @transform_3, window_bounds = array<i64: 32, 32>}, {pipeline_mode = #tpu.pipeline_mode<synchronous>, transform_indices = @transform_4, window_bounds = array<i64: 1, 32>}, {pipeline_mode = #tpu.pipeline_mode<synchronous>, transform_indices = @transform_5, window_bounds = array<i64: 32, 32>}, {pipeline_mode = #tpu.pipeline_mode<synchronous>, transform_indices = @transform_6, window_bounds = array<i64: 1, 32>}, {pipeline_mode = #tpu.pipeline_mode<synchronous>, transform_indices = @transform_7, window_bounds = array<i64: 32, 16>}, {pipeline_mode = #tpu.pipeline_mode<synchronous>, transform_indices = @transform_8, window_bounds = array<i64: 1, 16>}, {transform_indices = @transform_9, window_bounds = array<i64: 8, 16>}]} {
    %c0 = arith.constant 0 : index
    %c0_0 = arith.constant 0 : index
    %0 = vector.load %arg1[%c0, %c0_0] : memref<8x32xf32, #tpu.memory_space<vmem>>, vector<8x32xf32>
    %1 = arith.truncf %0 : vector<8x32xf32> to vector<8x32xbf16>
    %c0_1 = arith.constant 0 : index
    %c0_2 = arith.constant 0 : index
    %2 = vector.load %arg2[%c0_1, %c0_2] : memref<8x32xf32, #tpu.memory_space<vmem>>, vector<8x32xf32>
    %3 = arith.truncf %2 : vector<8x32xf32> to vector<8x32xbf16>
    %c0_3 = arith.constant 0 : index
    %c0_4 = arith.constant 0 : index
    %4 = vector.load %arg3[%c0_3, %c0_4] : memref<32x32xbf16, #tpu.memory_space<vmem>>, vector<32x32xbf16>
    %cst = arith.constant dense<0.000000e+00> : vector<8x32xf32>
    %5 = tpu.matmul %1, %4, %cst {dimension_numbers = #tpu.dot_dimension_numbers<[1], [0], [0], [1], [0, 0, 1, 1], [], []>} : vector<8x32xbf16>, vector<32x32xbf16>, vector<8x32xf32> -> vector<8x32xf32>
    %c0_5 = arith.constant 0 : index
    %c0_6 = arith.constant 0 : index
    %6 = vector.load %arg4[%c0_5, %c0_6] : memref<32x32xbf16, #tpu.memory_space<vmem>>, vector<32x32xbf16>
    %cst_7 = arith.constant dense<0.000000e+00> : vector<8x32xf32>
    %7 = tpu.matmul %3, %6, %cst_7 {dimension_numbers = #tpu.dot_dimension_numbers<[1], [0], [0], [1], [0, 0, 1, 1], [], []>} : vector<8x32xbf16>, vector<32x32xbf16>, vector<8x32xf32> -> vector<8x32xf32>
    %8 = arith.addf %5, %7 : vector<8x32xf32>
    %c0_8 = arith.constant 0 : index
    %c0_9 = arith.constant 0 : index
    %9 = vector.load %arg5[%c0_8, %c0_9] : memref<1x32xf32, #tpu.memory_space<vmem>>, vector<1x32xf32>
    %10 = vector.broadcast %9 : vector<1x32xf32> to vector<8x32xf32>
    %11 = arith.addf %8, %10 : vector<8x32xf32>
    %cst_10 = arith.constant 0.000000e+00 : f32
    %12 = vector.broadcast %cst_10 : f32 to vector<8x32xf32>
    %13 = arith.maximumf %11, %12 : vector<8x32xf32>
    %14 = arith.truncf %13 : vector<8x32xf32> to vector<8x32xbf16>
    %c0_11 = arith.constant 0 : index
    %c0_12 = arith.constant 0 : index
    %15 = vector.load %arg6[%c0_11, %c0_12] : memref<32x32xbf16, #tpu.memory_space<vmem>>, vector<32x32xbf16>
    %cst_13 = arith.constant dense<0.000000e+00> : vector<8x32xf32>
    %16 = tpu.matmul %14, %15, %cst_13 {dimension_numbers = #tpu.dot_dimension_numbers<[1], [0], [0], [1], [0, 0, 1, 1], [], []>} : vector<8x32xbf16>, vector<32x32xbf16>, vector<8x32xf32> -> vector<8x32xf32>
    %c0_14 = arith.constant 0 : index
    %c0_15 = arith.constant 0 : index
    %17 = vector.load %arg7[%c0_14, %c0_15] : memref<1x32xf32, #tpu.memory_space<vmem>>, vector<1x32xf32>
    %18 = vector.broadcast %17 : vector<1x32xf32> to vector<8x32xf32>
    %19 = arith.addf %16, %18 : vector<8x32xf32>
    %cst_16 = arith.constant 0.000000e+00 : f32
    %20 = vector.broadcast %cst_16 : f32 to vector<8x32xf32>
    %21 = arith.maximumf %19, %20 : vector<8x32xf32>
    %22 = arith.truncf %21 : vector<8x32xf32> to vector<8x32xbf16>
    %c0_17 = arith.constant 0 : index
    %c0_18 = arith.constant 0 : index
    %23 = vector.load %arg8[%c0_17, %c0_18] : memref<32x16xbf16, #tpu.memory_space<vmem>>, vector<32x16xbf16>
    %cst_19 = arith.constant dense<0.000000e+00> : vector<8x16xf32>
    %24 = tpu.matmul %22, %23, %cst_19 {dimension_numbers = #tpu.dot_dimension_numbers<[1], [0], [0], [1], [0, 0, 1, 1], [], []>} : vector<8x32xbf16>, vector<32x16xbf16>, vector<8x16xf32> -> vector<8x16xf32>
    %c0_20 = arith.constant 0 : index
    %c0_21 = arith.constant 0 : index
    %25 = vector.load %arg9[%c0_20, %c0_21] : memref<1x16xf32, #tpu.memory_space<vmem>>, vector<1x16xf32>
    %26 = vector.broadcast %25 : vector<1x16xf32> to vector<8x16xf32>
    %27 = arith.addf %24, %26 : vector<8x16xf32>
    %c0_22 = arith.constant 0 : index
    %c0_23 = arith.constant 0 : index
    %28 = vector.load %arg10[%c0_22, %c0_23] : memref<8x16xf32, #tpu.memory_space<vmem>>, vector<8x16xf32>
    tpu.vector_store %arg10[%c0_22, %c0_23], %27 {strides = array<i32>} : memref<8x16xf32, #tpu.memory_space<vmem>>, vector<8x16xf32>,
    return
  }
  func.func @transform_0(%arg0: i32) -> (i32, i32) {
    %c0_i32 = arith.constant 0 : i32
    %c0_i32_0 = arith.constant 0 : i32
    return %arg0, %c0_i32 : i32, i32
  }
  func.func @transform_1(%arg0: i32) -> (i32, i32) {
    %c0_i32 = arith.constant 0 : i32
    %c0_i32_0 = arith.constant 0 : i32
    return %arg0, %c0_i32 : i32, i32
  }
  func.func @transform_2(%arg0: i32) -> (i32, i32) {
    %c0_i32 = arith.constant 0 : i32
    %c0_i32_0 = arith.constant 0 : i32
    %c0_i32_1 = arith.constant 0 : i32
    return %c0_i32, %c0_i32_0 : i32, i32
  }
  func.func @transform_3(%arg0: i32) -> (i32, i32) {
    %c0_i32 = arith.constant 0 : i32
    %c0_i32_0 = arith.constant 0 : i32
    %c0_i32_1 = arith.constant 0 : i32
    return %c0_i32, %c0_i32_0 : i32, i32
  }
  func.func @transform_4(%arg0: i32) -> (i32, i32) {
    %c0_i32 = arith.constant 0 : i32
    %c0_i32_0 = arith.constant 0 : i32
    %c0_i32_1 = arith.constant 0 : i32
    return %c0_i32, %c0_i32_0 : i32, i32
  }
  func.func @transform_5(%arg0: i32) -> (i32, i32) {
    %c0_i32 = arith.constant 0 : i32
    %c0_i32_0 = arith.constant 0 : i32
    %c0_i32_1 = arith.constant 0 : i32
    return %c0_i32, %c0_i32_0 : i32, i32
  }
  func.func @transform_6(%arg0: i32) -> (i32, i32) {
    %c0_i32 = arith.constant 0 : i32
    %c0_i32_0 = arith.constant 0 : i32
    %c0_i32_1 = arith.constant 0 : i32
    return %c0_i32, %c0_i32_0 : i32, i32
  }
  func.func @transform_7(%arg0: i32) -> (i32, i32) {
    %c0_i32 = arith.constant 0 : i32
    %c0_i32_0 = arith.constant 0 : i32
    %c0_i32_1 = arith.constant 0 : i32
    return %c0_i32, %c0_i32_0 : i32, i32
  }
  func.func @transform_8(%arg0: i32) -> (i32, i32) {
    %c0_i32 = arith.constant 0 : i32
    %c0_i32_0 = arith.constant 0 : i32
    %c0_i32_1 = arith.constant 0 : i32
    return %c0_i32, %c0_i32_0 : i32, i32
  }
  func.func @transform_9(%arg0: i32) -> (i32, i32) {
    %c0_i32 = arith.constant 0 : i32
    %c0_i32_0 = arith.constant 0 : i32
    return %arg0, %c0_i32 : i32, i32
  }
}

</mosaic_0001>

<bundles_post_ra>
// kernel: tpu_custom_call.1
= control target key start
LH: loop header
LB: loop body
LE: loop exit
PB: predicated region body
PF: predicated region fallthrough
CT: control target
= control target key end

     0   :  { %s1277_s0 = inlined_call_operand.vmem [shape: f32[16,32], index: 0, kind: input, shape index: {}]   ;;  %s1278_s1 = inlined_call_operand.hbm [shape: f32[16,32], index: 1, kind: input, shape index: {}]   ;;  %s1279_s2 = inlined_call_operand.hbm [shape: bf16[32,32], index: 2, kind: input, shape index: {}]   ;;  %s1280_s3 = inlined_call_operand.hbm [shape: bf16[32,32], index: 3, kind: input, shape index: {}]   ;;  %s1281_s4 = inlined_call_operand.vmem [shape: f32[1,32], index: 4, kind: input, shape index: {}]   ;;  %s1282_s5 = inlined_call_operand.hbm [shape: bf16[32,32], index: 5, kind: input, shape index: {}]   ;;  %s1283_s6 = inlined_call_operand.vmem [shape: f32[1,32], index: 6, kind: input, shape index: {}]   ;;  %s1284_s7 = inlined_call_operand.vmem [shape: bf16[32,16], index: 7, kind: input, shape index: {}]   ;;  %s1285_s8 = inlined_call_operand.vmem [shape: f32[1,16], index: 8, kind: input, shape index: {}]   ;;  %s1286_s9 = inlined_call_operand.hbm [shape: f32[16,16], index: 9, kind: output, shape index: {}]  }
   0x1   :  { %1287 = sst [smem:[#allocation15_spill]] %s1279_s2 }
   0x2   :  { %1288 = sst [smem:[#allocation16_spill]] %s1280_s3 }
   0x3   :  { %1289 = sst [smem:[#allocation17_spill]] %s1282_s5 }
   0x4   :  { %14 = vsyncpa [#allocation3], 0 }
   0x5   :  { %16 = vsyncpa [#allocation3 + $0x1], 0 }
   0x6   :  { %17 = vsyncpa [#allocation6], 0 }
   0x7   :  { %18 = vsyncpa [#allocation9], 0 }
   0x8   :  { %19 = vsyncpa [#allocation4], 0 }
   0x9   :  { %21 = vsyncpa [#allocation4 + $0x1], 0  ;;  %s1093_s30 = smov 0   ;;  %s1095_s10 = smov 0  }
   0xa   :  { %s1097_s11 = smov 0   ;;  %s1099_s12 = smov 0  }
   0xb LB: > { %s1290_s2 = sld [smem:[#allocation15_spill]]  ;;  %s1117_s16 = sadd.s32 4294967295, %s1036_s12   ;;  %s1036_s12 = sphi %s1099_s12, %s1303_s12   ;;  %s1032_s11 = sphi %s1097_s11, %s1302_s11   ;;  %s1028_s10 = sphi %s1095_s10, %s1301_s10   ;;  %s1024_s30 = sphi %s1093_s30, %s1300_s30  }
   0xc   : > { %p698_p0 = scmp.ge.s32.totalorder %s1036_s12, 1  ;;  %p74_p1 = scmp.eq.s32.totalorder %s1117_s16, 0 }
   0xd   : > { %p257_p2 = scmp.lt.s32.totalorder %s1036_s12, 3  ;;  %s1038_s18 = smov [#allocation5]  }
   0xe   : > { %s270_s19 = sshll.u32 %s1038_s18, 4  ;;  %s1292_s3 = sld [smem:[#allocation16_spill]]  ;;  %s271_s19 = int_to_ptr.vmem [resolvable:$true] %s270_s19 }
   0xf   : > { %p1122_p3 = pnand %p698_p0, %p257_p2  ;;  %s1294_s5 = sld [smem:[#allocation17_spill]] }
  0x10   : > { %s1039_s27 = smov [#allocation7]   ;;  %s1040_s29 = smov 64  }
  0x11   : > { %s268_s15 = sshll.u32 %s1290_s2, 4  ;;  %p776_p4 = pneg %p1122_p3  ;;  %s269_s15 = int_to_ptr.hbm [resolvable:$true] %s268_s15 }
  0x12   : > { %s284_s28 = sshll.u32 %s1039_s27, 4  ;;  %s1041_s13 = smov 4   ;;  %s285_s28 = int_to_ptr.vmem [resolvable:$true] %s284_s28 }
  0x13   : > { %p1134_p6 = pnand %p776_p4, %p74_p1  ;;  %s1042_s14 = smov [#allocation8]  }
  0x14   : > { %s282_s22 = sshll.u32 %s1292_s3, 4  ;;  %s301_s18 = sshll.u32 %s1042_s14, 4  ;;  %s283_s22 = int_to_ptr.hbm [resolvable:$true] %s282_s22  ;;  %s302_s18 = int_to_ptr.vmem [resolvable:$true] %s301_s18 }
  0x15   : > { %s299_s26 = sshll.u32 %s1294_s5, 4  ;;  %s697_s20 = sadd.s32 4294967294, %s1036_s12   ;;  %s300_s26 = int_to_ptr.hbm [resolvable:$true] %s299_s26 }
  0x16   : > { %779 = dma.hbm_to_vmem [thread:$0]  (!%p1134_p6), %s269_s15, 256, %s271_s19, [#allocation6], %s1040_s29, %s1040_s29, %s1041_s13  }
  0x17   : > { %782 = dma.hbm_to_vmem [thread:$0]  (!%p1134_p6), %s283_s22, 256, %s285_s28, [#allocation6], %s1040_s29, %s1040_s29, %s1041_s13  }
  0x18   : > { %785 = dma.hbm_to_vmem [thread:$0]  (!%p1134_p6), %s300_s26, 256, %s302_s18, [#allocation9], %s1040_s29, %s1040_s29, %s1041_s13  }
  0x19   : > { %s1149_s21 = sadd.s32 1, %s1036_s12   ;;  %s60_s24 = sadd.s32 1, %s1032_s11 }
  0x1a   : > { %s57_s15 = ssub.s32 %s1036_s12, %s1149_s21  ;;  %p67_p7 = scmp.ne.s32.totalorder %s1032_s11, %s1028_s10 }
  0x1b   : > { %p58_p8 = scmp.eq.s32.totalorder %s57_s15, 0  ;;  %p68_p9 = scmp.eq.s32.totalorder %s1036_s12, 0 }
  0x1c   : > { %p73_p10 = scmp.ne.s32.totalorder %s1028_s10, %s1024_s30  ;;  %p244_p11 = scmp.eq.s32.totalorder %s1117_s16, 1 }
  0x1d   : > { %s1161_s19 = scalar_select %p58_p8, %s1032_s11, %s60_s24  }
  0x1e   : > { %p1165_p12 = por %p74_p1, %p73_p10  ;;  %p1169_p13 = por %p244_p11, %p67_p7 }
  0x1f   : > { %p250_p0 = scmp.eq.s32.totalorder %s697_s20, 1  ;;  %p69_p2 = por %p68_p9, %p67_p7 }
  0x20   : > { %s331_s25 = sand.u32 1, %s1032_s11   ;;  %p797_p6 = scmp.lt.s32.totalorder %s1036_s12, 2 }
  0x21   : > { %p1174_p4 = por %p250_p0, %p73_p10  ;;  %s703_s27 = sshll.u32 %s331_s25, 3 }
  0x22   : > { %s704_s28 = sshll.u32 %s1036_s12, 3  ;;  %s335_s24 = scalar_lea.vmem [#allocation2], %s703_s27 }
  0x23   : > { %s339_s14 = scalar_lea.hbm %s1278_s1, %s704_s28  ;;  %s343_s15 = sshll.u32 %s335_s24, 4  ;;  %s344_s15 = int_to_ptr.vmem [resolvable:$true] %s343_s15 }
  0x24   : > { %s341_s18 = sshll.u32 %s339_s14, 4  ;;  %p1183_p8 = pnand %p797_p6, %p69_p2  ;;  %s342_s18 = int_to_ptr.hbm [resolvable:$true] %s341_s18 }
  0x25   : > { %s332_s2 = scalar_lea.sflag [#allocation3], %s331_s25  ;;  %s932_s3 = sshra.s32 %s342_s18, 4  ;;  %s933_s3 = int_to_ptr.hbm [resolvable:$true] %s932_s3 }
  0x26   : > { %s934_s5 = scalar_lea.hbm %s933_s3, 8  ;;  %p936_p9 = pneg %p1183_p8 }
  0x27   : > { %p935_p7 = scmp.ne.s32.totalorder %s933_s3, %s934_s5  ;;  %s939_s27 = scalar_lea.hbm %s1278_s1, 16 }
  0x28   : > { %p940_p0 = scmp.lt.s32.totalorder %s933_s3, %s1278_s1  ;;  %p941_p2 = scmp.lt.s32.totalorder %s939_s27, %s934_s5 }
  0x29   : > { %p937_p10 = pnand %p936_p9, %p935_p7 }
  0x2a   : > { %p942_p6 = por %p941_p2, %p940_p0 }
  0x2b   : > { %p938_p11 = pneg %p937_p10 }
  0x2d   : > { %p943_p5 = pnand %p942_p6, %p938_p11 }
  0x2f   : > { %946 = shalt.err (!%p943_p5)
}
  0x30   : > { %789 = dma.hbm_to_vmem [thread:$0]  (!%p1183_p8), %s342_s18, 128, %s344_s15, %s332_s2  }
  0x31   : > { %352 = sbr.rel (%p1122_p3) target bundleno = 480 (0x1e0), region = 56  ;;  %s1200_s25 = sand.u32 (!%p1122_p3), 1, %s1028_s10  }
  0x32   : > { %s706_s24 = sshll.u32 (!%p1122_p3), %s1200_s25, 3  ;;  %s355_s28 = scalar_lea.sflag (!%p1122_p3), [#allocation3], %s1200_s25 }
  0x33   : > { %s358_s3 = scalar_lea.vmem (!%p1122_p3), [#allocation2], %s706_s24 }
  0x36   : > { %1007 = dma.done.wait (%p1165_p12), %s355_s28, 128  }
  0x37   : > { %1009 = vsyncadd (%p1165_p12), %s355_s28, 4294967168 }
  0x38   : > { %1011 = dma.done.wait (%p74_p1), [#allocation6], 512  }
  0x39   : > { %1013 = vsyncadd (%p74_p1), [#allocation6], 4294966784 }
  0x3a   : > { %1015 = dma.done.wait (%p74_p1), [#allocation9], 256  }
  0x3b   : > { %1017 = vsyncadd (%p74_p1), [#allocation9], 4294967040  ;;  %p413_p3 = scmp.lt.s32.totalorder %s1117_s16, 1  ;;  %v755_v0 = vld [vmem:[#allocation7 + $0x8] sm:$0xff]  ;;  %v753_v1 = vld [vmem:[#allocation5 + $0x8] sm:$0xff]  ;;  %vm442_vm0 = vcmask 261120  }
  0x3c   : > { %v754_v2 = vld [vmem:[#allocation7] sm:$0xff]  ;;  %v752_v3 = vld [vmem:[#allocation5] sm:$0xff]  ;;  %452 = vmatpush.bf16.msra.mxu0 %v755_v0  ;;  %480 = vmatpush.bf16.msra.mxu1 %v753_v1  ;;  %v757_v8 = vld [vmem:[#allocation8 + $0x8] sm:$0xff]  ;;  %s412_s20 = scalar_lea.vmem [#allocation10], %s706_s24  ;;  %vm568_vm1 = vcmask 130048   ;;  %s982_s24 = scalar_lea.hbm %s1286_s9, 16 }
  0x3d   : > { %s414_s2 = scalar_select %p413_p3, %s1117_s16, 1  ;;  %v420_v4 = vld [vmem:[%s358_s3] sm:$0xff]  ;;  %523 = vmatpush.bf16.msra.mxu2 %v757_v8  ;;  %v756_v9 = vld [vmem:[#allocation8] sm:$0xff] }
  0x3e   : > { %v421_v6 = vpack.c.bf16 %v420_v4, %v420_v4  ;;  %v839_v10 = vld [vmem:[%s1281_s4] ss:$0 sm:$0xff]  ;;  %v759_v19 = vld [vmem:[%s1284_s7 + $0x8] sm:$0xff]  ;;  %s583_s29 = sshll.u32 %s412_s20, 4  ;;  %s584_s29 = int_to_ptr.vmem [resolvable:$true] %s583_s29 }
  0x3f   : > { %s711_s5 = sshll.u32 %s414_s2, 3  ;;  %561 = vmatpush.bf16.msra.mxu3 %v759_v19  ;;  %v758_v20 = vld [vmem:[%s1284_s7] sm:$0xff]  ;;  %s749_s2 = sshll.u32 %s1117_s16, 3 }
  0x40   : > { %s416_s18 = scalar_lea.vmem %s1277_s0, %s711_s5  ;;  %453 = vmatpush.bf16.msra.mxu0 %v754_v2  ;;  %481 = vmatpush.bf16.msra.mxu1 %v752_v3  ;;  %v840_v21 = vld [vmem:[%s1283_s6] ss:$0 sm:$0xff]  ;;  %s581_s22 = scalar_lea.hbm %s1286_s9, %s749_s2 }
  0x41   : > { %v418_v5 = vld [vmem:[%s416_s18] sm:$0xff]  ;;  %524 = vmatpush.bf16.msra.mxu2 %v756_v9  ;;  %s585_s27 = sshll.u32 %s581_s22, 4  ;;  %s571_s16 = scalar_lea.sflag [#allocation4], %s1200_s25  ;;  %s586_s27 = int_to_ptr.hbm [resolvable:$true] %s585_s27 }
  0x42   : > { %v419_v7 = vpack.c.bf16 %v418_v5, %v418_v5  ;;  %v841_v27 = vld [vmem:[%s1285_s8] ss:$0 sm:$0xff]  ;;  %s976_s13 = sshra.s32 %s586_s27, 4  ;;  %s977_s13 = int_to_ptr.hbm [resolvable:$true] %s976_s13 }
  0x43   : > { %720 = vmatmul.msk.bf16.vlgmr.msra.gmra.mxu0 %vm442_vm0, %v421_v6  ;;  %562 = vmatpush.bf16.msra.mxu3 %v758_v20  ;;  %s978_s14 = scalar_lea.hbm %s977_s13, 8  ;;  %p983_p8 = scmp.lt.s32.totalorder %s977_s13, %s1286_s9 }
  0x44   : > { %729 = vmatmul.msk.bf16.vlgmr.msra.gmra.mxu1 %vm442_vm0, %v419_v7  ;;  %p979_p1 = scmp.ne.s32.totalorder %s977_s13, %s978_s14  ;;  %p984_p7 = scmp.lt.s32.totalorder %s982_s24, %s978_s14 }
  0x46   : > { %p980_p5 = pnand %p979_p1, %p1169_p13  ;;  %p985_p9 = por %p984_p7, %p983_p8 }
  0x48   : > { %p981_p12 = pneg %p980_p5 }
  0x4a   : > { %p986_p10 = pnand %p985_p9, %p981_p12 }
  0xc0   : > { %v455_v11 = vpop.f32.mrf.mxu0 }
  0xc1   : > { %v483_v12 = vpop.f32.mrf.mxu1 }
  0xc2   : > { %v484_v13 = vadd.f32 %v483_v12, %v455_v11 }
  0xc4   : > { %v491_v14 = vadd.f32 %v839_v10, %v484_v13 }
  0xc6   : > { %v492_v15 = vmax.f32 %v491_v14, 0.0 }
  0xc8   : > { %v493_v16 = vpack.c.bf16 %v492_v15, %v492_v15  ;;  %v457_v17 = vpop.f32.mrf.mxu0 }
  0xc9   : > { %v485_v18 = vpop.f32.mrf.mxu1 }
  0xca   : > { %738 = vmatmul.msk.bf16.vlgmr.msra.gmra.mxu2 %vm442_vm0, %v493_v16 }
 0x14d   : > { %v526_v22 = vpop.f32.mrf.mxu2 }
 0x14e   : > { %v527_v23 = vadd.f32 %v840_v21, %v526_v22 }
 0x150   : > { %v530_v24 = vmax.f32 %v527_v23, 0.0 }
 0x152   : > { %v531_v25 = vpack.c.bf16 %v530_v24, %v530_v24 }
 0x154   : > { %747 = vmatmul.msk.bf16.vlgmr.msra.gmra.mxu3 %vm442_vm0, %v531_v25 }
 0x155   : > { %v528_v26 = vpop.f32.mrf.mxu2 }
 0x1d7   : > { %v564_v28 = vpop.f32.mrf.mxu3 }
 0x1d8   : > { %v565_v29 = vadd.f32 %v841_v27, %v564_v28 }
 0x1da   : > { %569 = vst.msk [vmem:[%s412_s20] sm:$0xff] %vm568_vm1, %v565_v29 }
 0x1db   : > { %989 = shalt.err (!%p986_p10)
}
 0x1dc   : > { %774 = dma.vmem_to_hbm [thread:$0]  (%p1169_p13), %s584_s29, 128, %s586_s27, %s571_s16  }
 0x1df   : > { %v566_v30 = vpop.f32.mrf.mxu3 }
 0x1e0 PF: > { %s597_s25 = sand.u32 1, %s1024_s30   ;;  %p1299_p11 = scmp.ge.s32.totalorder %s1036_s12, 2 }
 0x1e1   : > { %s598_s17 = scalar_lea.sflag [#allocation4], %s597_s25 }
 0x1e2   : > { %p791_p0 = pnand %p1299_p11, %p1174_p4 }
 0x1e4   : > { %p792_p2 = pneg %p791_p0 }
 0x1e6   : > { %1019 = dma.done.wait (%p792_p2), %s598_s17, 128  }
 0x1e7   : > { %1021 = vsyncadd (%p792_p2), %s598_s17, 4294967168  ;;  %p24_p6 = scmp.ge.s32.totalorder %s1149_s21, 4   ;;  %s1300_s30 = smov %s1028_s10 }
 0x1e8   : > { %s1301_s10 = smov %s1032_s11  ;;  %s1302_s11 = smov %s1161_s19 }
 0x1e9   : > { %s1303_s12 = smov %s1149_s21  ;;  %26 = sbr.rel (!%p24_p6) target bundleno = 11 (0xb), region = 116 }
 0x1ee   :  { %604 = vsyncpa [#allocation3], 1 }
 0x1ef   :  { %606 = vsyncpa [#allocation3 + $0x1], 1 }
 0x1f0   :  { %607 = vsyncpa [#allocation6], 1 }
 0x1f1   :  { %608 = vsyncpa [#allocation9], 1 }
 0x1f2   :  { %609 = vsyncpa [#allocation4], 1 }
 0x1f3   :  { %611 = vsyncpa [#allocation4 + $0x1], 1 }

</bundles_post_ra>
